<compile_context>
chip_gen: v6e
topology: v6e:2x2x1
jax: 0.10.0
libtpu: 0.0.40
codegen_flags: <defaults>
</compile_context>

<pallas_src>
import functools

import jax
import jax.numpy as jnp
from jax.experimental import pallas as pl
from jax.experimental.pallas import tpu as pltpu


def _linear_kernel(x_ref, w_ref, b_ref, o_ref):
    # x_ref: (B, K)  -- resident across the whole grid
    # w_ref: (K, TN) -- one streamed, pre-transposed weight tile (bf16)
    # b_ref: (1, TN) -- matching bias tile (f32)
    # o_ref: (B, TN) -- lane-dense output tile
    x = x_ref[...].astype(w_ref.dtype)          # bf16 x bf16 -> f32 on the MXU
    acc = jnp.dot(x, w_ref[...], preferred_element_type=jnp.float32)
    o_ref[...] = (acc + b_ref[...].astype(jnp.float32)).astype(o_ref.dtype)


def _vmem_capacity_bytes() -> int:
    """Generation-aware VMEM capacity (falls back to a v7x-safe 64 MiB)."""
    try:
        return int(pltpu.get_tpu_info().vmem_capacity_bytes)
    except Exception:
        return 64 * 1024 * 1024


def _choose_tn(out_dim: int, max_tn: int) -> int:
    """Pick a lane-dense output tile width.

    Rules: multiple of 128 (or the full out_dim); never 0; never a
    pathologically small divisor (ragged masked tail beats tiny tiles);
    split a single big tile in two so v7x megacore sharding engages.
    """
    max_tn = max(128, max_tn - max_tn % 128)          # guard max_tn < 128
    if out_dim <= max_tn:
        half = out_dim // 2
        if out_dim >= 512 and half % 128 == 0:
            return half                               # >=2 tiles for megacore
        return out_dim
    for tn in range(max_tn, 127, -128):
        if tn >= max_tn // 2 and out_dim % tn == 0:
            return tn                                 # clean, big divisor
    return max_tn                                     # ragged masked tail


def _make_spec(block_shape, index_map, n_buffers=None):
    """BlockSpec with optional multi-buffering; degrade gracefully."""
    if n_buffers is not None and hasattr(pl, "Buffered"):
        try:
            return pl.BlockSpec(block_shape, index_map,
                                pipeline_mode=pl.Buffered(n_buffers))
        except TypeError:
            pass
    return pl.BlockSpec(block_shape, index_map)


def prepare_decoder_params(weight, bias, param_dtype=jnp.bfloat16):
    """One-time parameter prep (do this at load time, NOT per forward).

    Args:
      weight: (out_dim, h_dim)  PyTorch nn.Linear layout.
      bias:   (out_dim,)
    Returns:
      w_t:  (h_dim, out_dim) in `param_dtype` (bf16 by default).
      bias: (out_dim,) f32.
    """
    w_t = jnp.asarray(weight).T.astype(param_dtype)
    b = jnp.asarray(bias).astype(jnp.float32)
    return w_t, b


@functools.partial(
    jax.jit,
    static_argnames=("message_length", "vocab_size", "force_pallas", "max_tn"))
def message_decoder_forward(x, w_t, bias, message_length, vocab_size,
                            force_pallas: bool = False, max_tn=None):
    """Forward pass of MessageDecoder.

    Args:
      x:    (B, h_dim) activations.
      w_t:  (h_dim, message_length*vocab_size) pre-transposed weight
            (from prepare_decoder_params; bf16 recommended).
      bias: (message_length*vocab_size,) f32.
    Returns:
      (B, message_length, vocab_size) logits (dtype of x).
    """
    B, h_dim = x.shape
    out_dim = message_length * vocab_size
    assert w_t.shape == (h_dim, out_dim)
    assert bias.shape == (out_dim,)

    w_itemsize = w_t.dtype.itemsize
    w_bytes = out_dim * h_dim * w_itemsize
    if (out_dim <= 2048 or w_bytes < (2 << 20)) and not force_pallas:
        # Too small for a custom call: launch overhead exceeds the work.
        acc = jnp.dot(x.astype(w_t.dtype), w_t,
                      preferred_element_type=jnp.float32)
        logits = (acc + bias).astype(x.dtype)
        return logits.reshape(-1, message_length, vocab_size)

    vmem_cap = _vmem_capacity_bytes()
    if max_tn is None:
        # Target weight tile ~ 1/8 of VMEM: ~16 MiB on 128 MiB parts (v5e/v6e),
        # ~8 MiB on v7x (64 MiB VMEM) -> fewer grid steps, long DMAs, still
        # room for triple-buffering.
        w_tile_budget = max(1 << 20, min(16 << 20, vmem_cap // 8))
        max_tn = max(128, w_tile_budget // (h_dim * w_itemsize))
    tn = _choose_tn(out_dim, int(max_tn))
    grid_n = pl.cdiv(out_dim, tn)

    b2d = bias.reshape(1, out_dim)   # 2D for TPU-friendly broadcast (glue)

    # Explicit VMEM budget: resident x + triple-buffered weight tile +
    # double-buffered bias/output tiles + headroom, capped per-generation.
    x_bytes = B * h_dim * x.dtype.itemsize
    w_tile_bytes = tn * h_dim * w_itemsize
    b_tile_bytes = tn * bias.dtype.itemsize
    o_tile_bytes = B * tn * x.dtype.itemsize
    need = x_bytes + 3 * w_tile_bytes + 2 * (b_tile_bytes + o_tile_bytes) + (2 << 20)
    vmem_limit = int(min(max(need, 16 << 20), (vmem_cap * 3) // 4))

    cost = pl.CostEstimate(
        flops=2 * B * h_dim * out_dim,
        transcendentals=0,
        bytes_accessed=(x.size * x.dtype.itemsize
                        + w_t.size * w_itemsize
                        + bias.size * bias.dtype.itemsize
                        + B * out_dim * x.dtype.itemsize),
    )

    n_buf = 3 if grid_n >= 3 else None   # only ask for a 3rd buffer on long grids
    logits_flat = pl.pallas_call(
        _linear_kernel,
        out_shape=jax.ShapeDtypeStruct((B, out_dim), x.dtype),
        grid=(grid_n,),
        in_specs=[
            pl.BlockSpec((B, h_dim), lambda j: (0, 0)),        # x: resident block
            _make_spec((h_dim, tn), lambda j: (0, j), n_buf),  # weight stream
            _make_spec((1, tn), lambda j: (0, j), n_buf),      # bias stream
        ],
        out_specs=pl.BlockSpec((B, tn), lambda j: (0, j)),
        compiler_params=pltpu.CompilerParams(
            dimension_semantics=("parallel",),   # independent N tiles (megacore)
            vmem_limit_bytes=vmem_limit,
        ),
        cost_estimate=cost,
    )(x, w_t, b2d)

    # view(-1, message_length, vocab_size)
    return logits_flat.reshape(-1, message_length, vocab_size)


if __name__ == "__main__":
    key = jax.random.PRNGKey(0)
    kx, kw, kb, kx2, kw2, kb2 = jax.random.split(key, 6)

    # ---- Case 1: canonical small shapes (out_dim = 8*16 = 128) -------------
    B, h_dim, message_length, vocab_size = 2, 32, 8, 16
    out_dim = message_length * vocab_size

    x = jax.random.normal(kx, (B, h_dim), dtype=jnp.float32)
    weight = jax.random.normal(kw, (out_dim, h_dim), dtype=jnp.float32) * 0.05
    bias = jax.random.normal(kb, (out_dim,), dtype=jnp.float32) * 0.01

    w_t, b = prepare_decoder_params(weight, bias)       # bf16 + transpose, once
    logits = message_decoder_forward(x, w_t, b, message_length, vocab_size,
                                     force_pallas=True)  # exercise the kernel
    logits = jax.block_until_ready(logits)

    ref = (x @ weight.T + bias).reshape(-1, message_length, vocab_size)
    assert logits.shape == (B, message_length, vocab_size)
    assert jnp.allclose(logits, ref, atol=3e-2, rtol=3e-2)

    # ---- Case 2: non-divisible out_dim -> multi-tile grid + ragged tail ----
    ml2, vs2 = 7, 48                                     # out_dim = 336
    od2 = ml2 * vs2
    x2 = jax.random.normal(kx2, (B, h_dim), dtype=jnp.float32)
    w2 = jax.random.normal(kw2, (od2, h_dim), dtype=jnp.float32) * 0.05
    b2 = jax.random.normal(kb2, (od2,), dtype=jnp.float32) * 0.01

    w2_t, b2p = prepare_decoder_params(w2, b2)
    logits2 = message_decoder_forward(x2, w2_t, b2p, ml2, vs2,
                                      force_pallas=True, max_tn=256)
    logits2 = jax.block_until_ready(logits2)

    ref2 = (x2 @ w2.T + b2).reshape(-1, ml2, vs2)
    assert logits2.shape == (B, ml2, vs2)
    assert jnp.allclose(logits2, ref2, atol=3e-2, rtol=3e-2)

    print("KERNEL_OK")
</pallas_src>

<mosaic_0001>
module attributes {stable_mosaic.version = 11 : i64} {
  func.func @_linear_kernel(%arg0: i32, %arg1: memref<2x32xf32, #tpu.memory_space<vmem>>, %arg2: memref<32x128xbf16, #tpu.memory_space<vmem>>, %arg3: memref<1x128xf32, #tpu.memory_space<vmem>>, %arg4: memref<2x128xf32, #tpu.memory_space<vmem>>) attributes {dimension_semantics = [#tpu.dimension_semantics<parallel>], iteration_bounds = array<i64: 1>, scalar_prefetch = 0 : i64, scratch_operands = 0 : i64, tpu.core_type = #tpu.core_type<tc>, window_params = [{pipeline_mode = #tpu.pipeline_mode<synchronous>, transform_indices = @transform_0, window_bounds = array<i64: 2, 32>}, {transform_indices = @transform_1, window_bounds = array<i64: 32, 128>}, {transform_indices = @transform_2, window_bounds = array<i64: 1, 128>}, {transform_indices = @transform_3, window_bounds = array<i64: 2, 128>}]} {
    %c0 = arith.constant 0 : index
    %c0_0 = arith.constant 0 : index
    %0 = vector.load %arg1[%c0, %c0_0] : memref<2x32xf32, #tpu.memory_space<vmem>>, vector<2x32xf32>
    %1 = arith.truncf %0 : vector<2x32xf32> to vector<2x32xbf16>
    %c0_1 = arith.constant 0 : index
    %c0_2 = arith.constant 0 : index
    %2 = vector.load %arg2[%c0_1, %c0_2] : memref<32x128xbf16, #tpu.memory_space<vmem>>, vector<32x128xbf16>
    %cst = arith.constant dense<0.000000e+00> : vector<2x128xf32>
    %3 = tpu.matmul %1, %2, %cst {dimension_numbers = #tpu.dot_dimension_numbers<[1], [0], [0], [1], [0, 0, 1, 1], [], []>} : vector<2x32xbf16>, vector<32x128xbf16>, vector<2x128xf32> -> vector<2x128xf32>
    %c0_3 = arith.constant 0 : index
    %c0_4 = arith.constant 0 : index
    %4 = vector.load %arg3[%c0_3, %c0_4] : memref<1x128xf32, #tpu.memory_space<vmem>>, vector<1x128xf32>
    %5 = vector.broadcast %4 : vector<1x128xf32> to vector<2x128xf32>
    %6 = arith.addf %3, %5 : vector<2x128xf32>
    %c0_5 = arith.constant 0 : index
    %c0_6 = arith.constant 0 : index
    %7 = vector.load %arg4[%c0_5, %c0_6] : memref<2x128xf32, #tpu.memory_space<vmem>>, vector<2x128xf32>
    tpu.vector_store %arg4[%c0_5, %c0_6], %6 {strides = array<i32>} : memref<2x128xf32, #tpu.memory_space<vmem>>, vector<2x128xf32>,
    return
  }
  func.func @transform_0(%arg0: i32) -> (i32, i32) {
    %c0_i32 = arith.constant 0 : i32
    %c0_i32_0 = arith.constant 0 : i32
    %c0_i32_1 = arith.constant 0 : i32
    return %c0_i32, %c0_i32_0 : i32, i32
  }
  func.func @transform_1(%arg0: i32) -> (i32, i32) {
    %c0_i32 = arith.constant 0 : i32
    %c0_i32_0 = arith.constant 0 : i32
    return %c0_i32, %arg0 : i32, i32
  }
  func.func @transform_2(%arg0: i32) -> (i32, i32) {
    %c0_i32 = arith.constant 0 : i32
    %c0_i32_0 = arith.constant 0 : i32
    return %c0_i32, %arg0 : i32, i32
  }
  func.func @transform_3(%arg0: i32) -> (i32, i32) {
    %c0_i32 = arith.constant 0 : i32
    %c0_i32_0 = arith.constant 0 : i32
    return %c0_i32, %arg0 : i32, i32
  }
}

</mosaic_0001>

<bundles_post_ra>
// kernel: message_decoder_forward.1
= control target key start
LH: loop header
LB: loop body
LE: loop exit
PB: predicated region body
PF: predicated region fallthrough
CT: control target
= control target key end

     0   :  { %8 = vsyncpa [#allocation3], 0  ;;  %s222_s0 = inlined_call_operand.hbm [shape: f32[2,32], index: 0, kind: input, shape index: {}]   ;;  %s223_s1 = inlined_call_operand.hbm [shape: bf16[32,128], index: 1, kind: input, shape index: {}]   ;;  %s224_s2 = inlined_call_operand.vmem [shape: f32[1,128], index: 2, kind: input, shape index: {}]   ;;  %s225_s3 = inlined_call_operand.vmem [shape: f32[2,128], index: 3, kind: output, shape index: {}]  }
   0x1   :  { %9 = vsyncpa [#allocation5], 0  ;;  %s184_s12 = smov [#allocation2]   ;;  %s185_s14 = smov [#allocation4]  }
   0x2   :  { %s16_s13 = sshll.u32 %s184_s12, 4  ;;  %s25_s15 = sshll.u32 %s185_s14, 4  ;;  %s17_s13 = int_to_ptr.vmem [resolvable:$true] %s16_s13  ;;  %s26_s15 = int_to_ptr.vmem [resolvable:$true] %s25_s15 }
   0x3   :  { %s148_s16 = scalar_lea.vmem %s17_s13, 32  ;;  %p153_p1 = scmp.lt.s32.totalorder %s17_s13, %s17_s13 }
   0x4   :  { %p149_p0 = scmp.ne.s32.totalorder %s17_s13, %s148_s16  ;;  %p154_p2 = scmp.lt.s32.totalorder %s148_s16, %s148_s16 }
   0x6   :  { %p155_p3 = por %p154_p2, %p153_p1 }
   0x8   :  { %p156_p4 = pnand %p155_p3, %p149_p0 }
   0xa   :  { %159 = shalt.err (!%p156_p4)
}
   0xb   :  { %19 = dma.hbm_to_vmem [thread:$0]  %s222_s0, 32, %s17_s13, [#allocation3]  }
   0xc   :  { %s168_s19 = scalar_lea.vmem %s26_s15, 256  ;;  %p173_p6 = scmp.lt.s32.totalorder %s26_s15, %s26_s15 }
   0xd   :  { %p169_p5 = scmp.ne.s32.totalorder %s26_s15, %s168_s19  ;;  %p174_p7 = scmp.lt.s32.totalorder %s168_s19, %s168_s19 }
   0xf   :  { %p175_p8 = por %p174_p7, %p173_p6 }
  0x11   :  { %p176_p9 = pnand %p175_p8, %p169_p5 }
  0x13   :  { %179 = shalt.err (!%p176_p9)
}
  0x14   :  { %s186_s20 = smov 64   ;;  %s187_s21 = smov 4  }
  0x15   :  { %31 = dma.hbm_to_vmem [thread:$0]  %s223_s1, 256, %s26_s15, [#allocation5], %s186_s20, %s186_s20, %s187_s21  }
  0x16   :  { %180 = dma.done.wait [#allocation3], 32  }
  0x17   :  { %181 = vsyncadd [#allocation3], 4294967264 }
  0x18   :  { %182 = dma.done.wait [#allocation5], 256  }
  0x19   :  { %183 = vsyncadd [#allocation5], 4294967040  ;;  %v188_v0 = vmov 0.0   ;;  %vm189_vm0 = vmmov 0   ;;  %v138_v1 = vld [vmem:[#allocation4 + $0x8] sm:$0xff]   ;;  %v139_v2 = vld [vmem:[#allocation4] sm:$0xff]  }
  0x1a   :  { %124 = vmatprep.subr.bf16.mxu0 %v188_v0  ;;  %128 = vmatprep.mubr.msk.bf16.mxu0 %vm189_vm0, %v188_v0  ;;  %v41_v3 = vld [vmem:[#allocation2] sm:$0x3]  ;;  %vm66_vm1 = vcmask 261120  }
  0x1b   :  { %125 = vmatpush3.bf16.msra.mxu0 %v138_v1  ;;  %v42_v4 = vpack.c.bf16 %v41_v3, %v41_v3  ;;  %v117_v5 = vld [vmem:[%s224_s2] ss:$0 sm:$0xff] }
  0x1c   :  { %126 = vmatprep.subr.bf16.mxu0 %v188_v0 }
  0x1f   :  { %127 = vmatpush3.bf16.msra.mxu0 %v139_v2 }
  0x22   :  { %129 = vmatmul.mubr.msk.bf16.vlgmr.msra.gmra.mxu0 %vm66_vm1, %v42_v4 }
  0xe2   :  { %v104_v6 = vpop.f32.mrf.mxu0 }
  0xe3   :  { %v105_v7 = vadd.f32 %v117_v5, %v104_v6 }
  0xe4   :  { %v130_v8 = vpop.f32.mrf.mxu0 }
  0xe5   :  { %110 = vst [vmem:[%s225_s3] sm:$0x3] %v105_v7 }
  0xe6   :  { %v107_v9 = vpop.f32.mrf.mxu0 }
  0xe8   :  { %v131_v10 = vpop.f32.mrf.mxu0 }
  0xe9   :  { %115 = vsyncpa [#allocation3], 1 }
  0xea   :  { %116 = vsyncpa [#allocation5], 1 }

</bundles_post_ra>
